<compile_context>
chip_gen: v7x
topology: tpu7x:2x2x1
jax: 0.10.0
libtpu: 0.0.40
codegen_flags: <defaults>
</compile_context>

<pallas_src>
import functools

import jax
import jax.numpy as jnp
from jax.experimental import pallas as pl
from jax.experimental.pallas import tpu as pltpu

GAMMA = 2
IGNORE_INDEX = 255


def _round_up(x, m):
    return ((x + m - 1) // m) * m


def _focal_loss_kernel(x_ref, t_ref, out_ref, sum_acc, cnt_acc, *,
                       gamma, ignore_index, n_rows, tile_rows, n_inner):
    p_id = pl.program_id(0)
    i = pl.program_id(1)

    @pl.when(i == 0)
    def _init():
        sum_acc[...] = jnp.zeros_like(sum_acc)
        cnt_acc[...] = jnp.zeros_like(cnt_acc)

    x = x_ref[...].astype(jnp.float32)   # (R, C)  f32 in VMEM
    t = t_ref[...]                        # (R, 1)  int32

    # Numerically stable softmax pieces along the class (lane) axis.
    m = jnp.max(x, axis=-1, keepdims=True)
    z = x - m
    e = jnp.exp(z)                                   # EUP
    s = jnp.sum(e, axis=-1, keepdims=True)           # XLU, >= 1

    # Gather only the target column of z (one masked lane reduce).
    cols = jax.lax.broadcasted_iota(jnp.int32, x.shape, 1)
    onehot = cols == t
    z_t = jnp.sum(jnp.where(onehot, z, 0.0), axis=-1, keepdims=True)  # (R, 1)

    # Per-row focal term, all on (R, 1) shapes.
    logp_t = z_t - jnp.log(s)
    p_t = jnp.exp(z_t) * pl.reciprocal(s, approx=True)
    if float(gamma) == int(gamma) and int(gamma) >= 0:
        # Even/odd integer gamma: VPU multiply chain; tolerant of p_t ~ 1+eps.
        w = jnp.ones_like(p_t)
        q = 1.0 - p_t
        for _ in range(int(gamma)):
            w = w * q
    else:
        # TODO(synk): non-integer gamma falls back to a transcendental pow.
        q = jnp.maximum(1.0 - p_t, 0.0)   # clamp: approx reciprocal can give p_t > 1
        w = q ** gamma
    loss_row = -(w * logp_t)                          # (R, 1)

    # Validity: real (in-range) row AND target != ignore_index.  Rows from the
    # ragged last tile / the clamped duplicate tile are masked here, so their
    # (unspecified) loaded contents never reach the accumulators.
    rows = jax.lax.broadcasted_iota(jnp.int32, t.shape, 0)
    block_id = p_id * n_inner + i
    global_row = block_id * tile_rows + rows
    valid = (global_row < n_rows) & (t != ignore_index)

    sum_acc[...] = sum_acc[...] + jnp.sum(jnp.where(valid, loss_row, 0.0))
    cnt_acc[...] = cnt_acc[...] + jnp.sum(jnp.where(valid, 1.0, 0.0))

    @pl.when(i == pl.num_programs(1) - 1)
    def _finalize():
        total = jnp.sum(sum_acc[...])
        count = jnp.sum(cnt_acc[...])
        r = jax.lax.broadcasted_iota(jnp.int32, out_ref.shape, 0)
        c = jax.lax.broadcasted_iota(jnp.int32, out_ref.shape, 1)
        vals = jnp.where(c == 0, total, jnp.where(c == 1, count, 0.0))
        out_ref[...] = jnp.where(r == 0, vals, 0.0)


def focal_loss(inputs, targets, *, gamma=GAMMA, ignore_index=IGNORE_INDEX,
               tile_rows=None, vmem_input_budget_bytes=24 * 1024 * 1024):
    """inputs: (N, C) float logits (f32 or bf16), targets: (N,) int labels.

    Returns the scalar f32 focal loss (mean over non-ignored rows).
    """
    N, C = inputs.shape
    itemsize = jnp.dtype(inputs.dtype).itemsize
    C_lanes = _round_up(max(C, 1), 128)   # VMEM lane footprint (HBM traffic is N*C)

    # Row tile: largest multiple of 16 whose double-buffered inputs
    # (logits tile + lane-padded (R,1) targets tile) fit the budget.
    if tile_rows is None:
        per_row_bytes = 2 * (C_lanes * itemsize + 128 * 4)
        tile_rows = vmem_input_budget_bytes // per_row_bytes
        tile_rows = min(tile_rows, 16384)
    tile_rows = max(16, (int(tile_rows) // 16) * 16)
    tile_rows = min(tile_rows, _round_up(N, 16))
    # TODO(synk): for extremely large C (tile_rows=16 still over budget) the
    # class axis itself would need tiling (online max/sum softmax).

    n_tiles = -(-N // tile_rows)
    n_par = 2 if n_tiles >= 2 else 1          # dual-TC split on v7x
    n_inner = -(-n_tiles // n_par)

    t2 = targets.reshape(N, 1).astype(jnp.int32)

    kernel = functools.partial(
        _focal_loss_kernel, gamma=gamma, ignore_index=ignore_index,
        n_rows=N, tile_rows=tile_rows, n_inner=n_inner)

    # Clamp the block index so the (possible) duplicate tile when n_tiles is
    # odd re-reads the last in-bounds tile; its rows are masked in-kernel.
    def in_row_map(p, i):
        return (jnp.minimum(p * n_inner + i, n_tiles - 1), 0)

    need_bytes = 2 * tile_rows * (C_lanes * itemsize + 128 * 4) + (1 << 20)
    vmem_limit = int(min(48 * (1 << 20), max(32 * (1 << 20), need_bytes)))

    out = pl.pallas_call(
        kernel,
        out_shape=jax.ShapeDtypeStruct((n_par * 8, 128), jnp.float32),
        grid_spec=pltpu.PrefetchScalarGridSpec(
            num_scalar_prefetch=0,
            grid=(n_par, n_inner),
            in_specs=[
                pl.BlockSpec((tile_rows, C), in_row_map),   # last dim == full C
                pl.BlockSpec((tile_rows, 1), in_row_map),
            ],
            out_specs=pl.BlockSpec((8, 128), lambda p, i: (p, 0)),
            scratch_shapes=[
                pltpu.VMEM((1, 1), jnp.float32),   # running -sum of picked terms
                pltpu.VMEM((1, 1), jnp.float32),   # running valid-row count
            ],
        ),
        compiler_params=pltpu.CompilerParams(
            dimension_semantics=("parallel", "arbitrary"),
            vmem_limit_bytes=vmem_limit,
        ),
    )(inputs, t2)

    total = jnp.sum(out[:, 0])
    count = jnp.sum(out[:, 1])
    # NOTE: if every target == ignore_index, count == 0 -> NaN/Inf (matches nn.NLLLoss).
    return total / count


def focal_loss_ref(inputs, targets, *, gamma=GAMMA, ignore_index=IGNORE_INDEX):
    """Pure-JAX reference mirroring the PyTorch module (ignore_index-safe gather)."""
    x = inputs.astype(jnp.float32)
    logp = jax.nn.log_softmax(x, axis=-1)
    p = jax.nn.softmax(x, axis=-1)
    mod = (1.0 - p) ** gamma * logp
    valid = targets != ignore_index
    safe_t = jnp.where(valid, targets, 0).astype(jnp.int32)
    picked = jnp.take_along_axis(mod, safe_t[:, None], axis=-1)[:, 0]
    picked = jnp.where(valid, picked, 0.0)
    return -jnp.sum(picked) / jnp.sum(valid.astype(jnp.float32))


if __name__ == "__main__":
    key = jax.random.PRNGKey(0)
    k1, k2, k3 = jax.random.split(key, 3)

    # Small (N, C) logits with some ignore_index labels.
    N, C = 64, 10
    x = jax.random.normal(k1, (N, C), dtype=jnp.float32)
    t = jax.random.randint(k2, (N,), 0, C, dtype=jnp.int32)
    ignore_mask = jax.random.bernoulli(k3, 0.2, (N,))
    t = jnp.where(ignore_mask, jnp.int32(IGNORE_INDEX), t)
    t = t.at[0].set(jnp.int32(3))   # guarantee at least one valid row

    checks = []
    checks.append((x, t, {}, 2e-3))                    # single tile, auto sizing
    checks.append((x, t, dict(tile_rows=16), 2e-3))    # multi-tile, even tile count

    # Ragged everything: N not a multiple of 16, C not a multiple of 128,
    # odd tile count -> exercises the clamped duplicate block path.
    k4, k5 = jax.random.split(k1)
    x2 = jax.random.normal(k4, (37, 130), dtype=jnp.float32)
    t2 = jax.random.randint(k5, (37,), 0, 130, dtype=jnp.int32)
    t2 = t2.at[5].set(jnp.int32(IGNORE_INDEX))
    checks.append((x2, t2, dict(tile_rows=16), 2e-3))

    # bf16 logits path (no wrapper upcast; f32 only inside VMEM).
    x3 = x.astype(jnp.bfloat16)
    checks.append((x3, t, dict(tile_rows=16), 1e-2))

    for xi, ti, kw, tol in checks:
        loss = focal_loss(xi, ti, **kw)
        jax.block_until_ready(loss)
        ref = focal_loss_ref(xi, ti)
        assert jnp.allclose(loss, ref, rtol=tol, atol=tol), (kw, loss, ref)

    print("KERNEL_OK")
</pallas_src>

<mosaic_0001>
module attributes {stable_mosaic.version = 11 : i64} {
  func.func @_focal_loss_kernel(%arg0: i32, %arg1: i32, %arg2: memref<64x10xf32, #tpu.memory_space<vmem>>, %arg3: memref<64x1xi32, #tpu.memory_space<vmem>>, %arg4: memref<8x128xf32, #tpu.memory_space<vmem>>, %arg5: memref<1x1xf32, #tpu.memory_space<vmem>>, %arg6: memref<1x1xf32, #tpu.memory_space<vmem>>) attributes {dimension_semantics = [#tpu.dimension_semantics<parallel>, #tpu.dimension_semantics<arbitrary>], iteration_bounds = array<i64: 1, 1>, scalar_prefetch = 0 : i64, scratch_operands = 2 : i64, tpu.core_type = #tpu.core_type<tc>, window_params = [{transform_indices = @transform_0, window_bounds = array<i64: 64, 10>}, {transform_indices = @transform_1, window_bounds = array<i64: 64, 1>}, {transform_indices = @transform_2, window_bounds = array<i64: 8, 128>}]} {
    %c0_i32 = arith.constant 0 : i32
    %0 = arith.cmpi eq, %arg1, %c0_i32 : i32
    %1 = arith.extui %0 : i1 to i32
    %c0_i32_0 = arith.constant 0 : i32
    %2 = arith.cmpi ne, %1, %c0_i32_0 : i32
    scf.if %2 {
      %cst_26 = arith.constant 0.000000e+00 : f32
      %67 = vector.broadcast %cst_26 : f32 to vector<1x1xf32>
      %c0_27 = arith.constant 0 : index
      %c0_28 = arith.constant 0 : index
      %68 = vector.load %arg5[%c0_27, %c0_28] : memref<1x1xf32, #tpu.memory_space<vmem>>, vector<1x1xf32>
      tpu.vector_store %arg5[%c0_27, %c0_28], %67 {strides = array<i32>} : memref<1x1xf32, #tpu.memory_space<vmem>>, vector<1x1xf32>,
      %cst_29 = arith.constant 0.000000e+00 : f32
      %69 = vector.broadcast %cst_29 : f32 to vector<1x1xf32>
      %c0_30 = arith.constant 0 : index
      %c0_31 = arith.constant 0 : index
      %70 = vector.load %arg6[%c0_30, %c0_31] : memref<1x1xf32, #tpu.memory_space<vmem>>, vector<1x1xf32>
      tpu.vector_store %arg6[%c0_30, %c0_31], %69 {strides = array<i32>} : memref<1x1xf32, #tpu.memory_space<vmem>>, vector<1x1xf32>,
    } else {
    }
    %c0 = arith.constant 0 : index
    %c0_1 = arith.constant 0 : index
    %3 = vector.load %arg2[%c0, %c0_1] : memref<64x10xf32, #tpu.memory_space<vmem>>, vector<64x10xf32>
    %c0_2 = arith.constant 0 : index
    %c0_3 = arith.constant 0 : index
    %4 = vector.load %arg3[%c0_2, %c0_3] : memref<64x1xi32, #tpu.memory_space<vmem>>, vector<64x1xi32>
    %cst = arith.constant dense<0xFF800000> : vector<64xf32>
    %5 = vector.multi_reduction <maximumf>, %3, %cst [1] : vector<64x10xf32> to vector<64xf32>
    %6 = vector.shape_cast %5 : vector<64xf32> to vector<64x1xf32>
    %7 = vector.broadcast %6 : vector<64x1xf32> to vector<64x10xf32>
    %8 = arith.subf %3, %7 : vector<64x10xf32>
    %9 = math.exp %8 : vector<64x10xf32>
    %cst_4 = arith.constant dense<0.000000e+00> : vector<64xf32>
    %10 = vector.multi_reduction <add>, %9, %cst_4 [1] : vector<64x10xf32> to vector<64xf32>
    %11 = vector.shape_cast %10 : vector<64xf32> to vector<64x1xf32>
    %12 = tpu.iota {dimensions = array<i32: 1>} : vector<64x10xi32>
    %13 = vector.broadcast %4 : vector<64x1xi32> to vector<64x10xi32>
    %14 = arith.cmpi eq, %12, %13 : vector<64x10xi32>
    %cst_5 = arith.constant 0.000000e+00 : f32
    %15 = vector.broadcast %cst_5 : f32 to vector<64x10xf32>
    %16 = arith.select %14, %8, %15 : vector<64x10xi1>, vector<64x10xf32>
    %cst_6 = arith.constant dense<0.000000e+00> : vector<64xf32>
    %17 = vector.multi_reduction <add>, %16, %cst_6 [1] : vector<64x10xf32> to vector<64xf32>
    %18 = vector.shape_cast %17 : vector<64xf32> to vector<64x1xf32>
    %19 = math.log %11 : vector<64x1xf32>
    %20 = arith.subf %18, %19 : vector<64x1xf32>
    %21 = math.exp %18 : vector<64x1xf32>
    %22 = tpu.reciprocal %11 {approx = true} : vector<64x1xf32> -> vector<64x1xf32>
    %23 = arith.mulf %21, %22 : vector<64x1xf32>
    %cst_7 = arith.constant 1.000000e+00 : f32
    %24 = vector.broadcast %cst_7 : f32 to vector<64x1xf32>
    %cst_8 = arith.constant 1.000000e+00 : f32
    %25 = vector.broadcast %cst_8 : f32 to vector<64x1xf32>
    %26 = arith.subf %25, %23 : vector<64x1xf32>
    %27 = arith.mulf %24, %26 : vector<64x1xf32>
    %28 = arith.mulf %27, %26 : vector<64x1xf32>
    %29 = arith.mulf %28, %20 : vector<64x1xf32>
    %cst_9 = arith.constant 0.000000e+00 : f32
    %30 = vector.broadcast %cst_9 : f32 to vector<64x1xf32>
    %31 = arith.subf %30, %29 : vector<64x1xf32>
    %32 = tpu.iota {dimensions = array<i32: 0>} : vector<64x1xi32>
    %c1_i32 = arith.constant 1 : i32
    %33 = arith.muli %arg0, %c1_i32 : i32
    %34 = arith.addi %33, %arg1 : i32
    %c64_i32 = arith.constant 64 : i32
    %35 = arith.muli %34, %c64_i32 : i32
    %36 = vector.broadcast %35 : i32 to vector<64x1xi32>
    %37 = arith.addi %36, %32 : vector<64x1xi32>
    %c64_i32_10 = arith.constant 64 : i32
    %38 = vector.broadcast %c64_i32_10 : i32 to vector<64x1xi32>
    %39 = arith.cmpi slt, %37, %38 : vector<64x1xi32>
    %c255_i32 = arith.constant 255 : i32
    %40 = vector.broadcast %c255_i32 : i32 to vector<64x1xi32>
    %41 = arith.cmpi ne, %4, %40 : vector<64x1xi32>
    %42 = arith.andi %39, %41 : vector<64x1xi1>
    %c0_11 = arith.constant 0 : index
    %c0_12 = arith.constant 0 : index
    %43 = vector.load %arg5[%c0_11, %c0_12] : memref<1x1xf32, #tpu.memory_space<vmem>>, vector<1x1xf32>
    %cst_13 = arith.constant 0.000000e+00 : f32
    %44 = vector.broadcast %cst_13 : f32 to vector<64x1xf32>
    %45 = arith.select %42, %31, %44 : vector<64x1xi1>, vector<64x1xf32>
    %46 = vector.shape_cast %45 : vector<64x1xf32> to vector<1x64x1xf32>
    %cst_14 = arith.constant dense<0.000000e+00> : vector<1xf32>
    %47 = vector.multi_reduction <add>, %46, %cst_14 [1, 2] : vector<1x64x1xf32> to vector<1xf32>
    %48 = vector.shape_cast %47 : vector<1xf32> to vector<1x1x1xf32>
    %49 = vector.extract %48[0, 0, 0] : f32 from vector<1x1x1xf32>
    %50 = vector.broadcast %49 : f32 to vector<1x1xf32>
    %51 = arith.addf %43, %50 : vector<1x1xf32>
    %c0_15 = arith.constant 0 : index
    %c0_16 = arith.constant 0 : index
    %52 = vector.load %arg5[%c0_15, %c0_16] : memref<1x1xf32, #tpu.memory_space<vmem>>, vector<1x1xf32>
    tpu.vector_store %arg5[%c0_15, %c0_16], %51 {strides = array<i32>} : memref<1x1xf32, #tpu.memory_space<vmem>>, vector<1x1xf32>,
    %c0_17 = arith.constant 0 : index
    %c0_18 = arith.constant 0 : index
    %53 = vector.load %arg6[%c0_17, %c0_18] : memref<1x1xf32, #tpu.memory_space<vmem>>, vector<1x1xf32>
    %cst_19 = arith.constant 1.000000e+00 : f32
    %cst_20 = arith.constant 0.000000e+00 : f32
    %54 = vector.broadcast %cst_19 : f32 to vector<64x1xf32>
    %55 = vector.broadcast %cst_20 : f32 to vector<64x1xf32>
    %56 = arith.select %42, %54, %55 : vector<64x1xi1>, vector<64x1xf32>
    %57 = vector.shape_cast %56 : vector<64x1xf32> to vector<1x64x1xf32>
    %cst_21 = arith.constant dense<0.000000e+00> : vector<1xf32>
    %58 = vector.multi_reduction <add>, %57, %cst_21 [1, 2] : vector<1x64x1xf32> to vector<1xf32>
    %59 = vector.shape_cast %58 : vector<1xf32> to vector<1x1x1xf32>
    %60 = vector.extract %59[0, 0, 0] : f32 from vector<1x1x1xf32>
    %61 = vector.broadcast %60 : f32 to vector<1x1xf32>
    %62 = arith.addf %53, %61 : vector<1x1xf32>
    %c0_22 = arith.constant 0 : index
    %c0_23 = arith.constant 0 : index
    %63 = vector.load %arg6[%c0_22, %c0_23] : memref<1x1xf32, #tpu.memory_space<vmem>>, vector<1x1xf32>
    tpu.vector_store %arg6[%c0_22, %c0_23], %62 {strides = array<i32>} : memref<1x1xf32, #tpu.memory_space<vmem>>, vector<1x1xf32>,
    %c0_i32_24 = arith.constant 0 : i32
    %64 = arith.cmpi eq, %arg1, %c0_i32_24 : i32
    %65 = arith.extui %64 : i1 to i32
    %c0_i32_25 = arith.constant 0 : i32
    %66 = arith.cmpi ne, %65, %c0_i32_25 : i32
    scf.if %66 {
      %c0_26 = arith.constant 0 : index
      %c0_27 = arith.constant 0 : index
      %67 = vector.load %arg5[%c0_26, %c0_27] : memref<1x1xf32, #tpu.memory_space<vmem>>, vector<1x1xf32>
      %68 = vector.shape_cast %67 : vector<1x1xf32> to vector<1x1x1xf32>
      %cst_28 = arith.constant dense<0.000000e+00> : vector<1xf32>
      %69 = vector.multi_reduction <add>, %68, %cst_28 [1, 2] : vector<1x1x1xf32> to vector<1xf32>
      %70 = vector.shape_cast %69 : vector<1xf32> to vector<1x1x1xf32>
      %71 = vector.extract %70[0, 0, 0] : f32 from vector<1x1x1xf32>
      %c0_29 = arith.constant 0 : index
      %c0_30 = arith.constant 0 : index
      %72 = vector.load %arg6[%c0_29, %c0_30] : memref<1x1xf32, #tpu.memory_space<vmem>>, vector<1x1xf32>
      %73 = vector.shape_cast %72 : vector<1x1xf32> to vector<1x1x1xf32>
      %cst_31 = arith.constant dense<0.000000e+00> : vector<1xf32>
      %74 = vector.multi_reduction <add>, %73, %cst_31 [1, 2] : vector<1x1x1xf32> to vector<1xf32>
      %75 = vector.shape_cast %74 : vector<1xf32> to vector<1x1x1xf32>
      %76 = vector.extract %75[0, 0, 0] : f32 from vector<1x1x1xf32>
      %77 = tpu.iota {dimensions = array<i32: 0>} : vector<8x128xi32>
      %78 = tpu.iota {dimensions = array<i32: 1>} : vector<8x128xi32>
      %c0_i32_32 = arith.constant 0 : i32
      %79 = vector.broadcast %c0_i32_32 : i32 to vector<8x128xi32>
      %80 = arith.cmpi eq, %78, %79 : vector<8x128xi32>
      %c1_i32_33 = arith.constant 1 : i32
      %81 = vector.broadcast %c1_i32_33 : i32 to vector<8x128xi32>
      %82 = arith.cmpi eq, %78, %81 : vector<8x128xi32>
      %cst_34 = arith.constant 0.000000e+00 : f32
      %83 = vector.broadcast %76 : f32 to vector<8x128xf32>
      %84 = vector.broadcast %cst_34 : f32 to vector<8x128xf32>
      %85 = arith.select %82, %83, %84 : vector<8x128xi1>, vector<8x128xf32>
      %86 = vector.broadcast %71 : f32 to vector<8x128xf32>
      %87 = arith.select %80, %86, %85 : vector<8x128xi1>, vector<8x128xf32>
      %c0_i32_35 = arith.constant 0 : i32
      %88 = vector.broadcast %c0_i32_35 : i32 to vector<8x128xi32>
      %89 = arith.cmpi eq, %77, %88 : vector<8x128xi32>
      %cst_36 = arith.constant 0.000000e+00 : f32
      %90 = vector.broadcast %cst_36 : f32 to vector<8x128xf32>
      %91 = arith.select %89, %87, %90 : vector<8x128xi1>, vector<8x128xf32>
      %c0_37 = arith.constant 0 : index
      %c0_38 = arith.constant 0 : index
      %92 = vector.load %arg4[%c0_37, %c0_38] : memref<8x128xf32, #tpu.memory_space<vmem>>, vector<8x128xf32>
      tpu.vector_store %arg4[%c0_37, %c0_38], %91 {strides = array<i32>} : memref<8x128xf32, #tpu.memory_space<vmem>>, vector<8x128xf32>,
    } else {
    }
    return
  }
  func.func @transform_0(%arg0: i32, %arg1: i32) -> (i32, i32) {
    %c1_i32 = arith.constant 1 : i32
    %0 = arith.muli %arg0, %c1_i32 : i32
    %1 = arith.addi %0, %arg1 : i32
    %c0_i32 = arith.constant 0 : i32
    %2 = arith.minsi %1, %c0_i32 : i32
    %c0_i32_0 = arith.constant 0 : i32
    %c0_i32_1 = arith.constant 0 : i32
    return %2, %c0_i32_0 : i32, i32
  }
  func.func @transform_1(%arg0: i32, %arg1: i32) -> (i32, i32) {
    %c1_i32 = arith.constant 1 : i32
    %0 = arith.muli %arg0, %c1_i32 : i32
    %1 = arith.addi %0, %arg1 : i32
    %c0_i32 = arith.constant 0 : i32
    %2 = arith.minsi %1, %c0_i32 : i32
    %c0_i32_0 = arith.constant 0 : i32
    %c0_i32_1 = arith.constant 0 : i32
    return %2, %c0_i32_0 : i32, i32
  }
  func.func @transform_2(%arg0: i32, %arg1: i32) -> (i32, i32) {
    %c0_i32 = arith.constant 0 : i32
    %c0_i32_0 = arith.constant 0 : i32
    return %arg0, %c0_i32 : i32, i32
  }
}

</mosaic_0001>

<bundles_post_ra>
// kernel: tpu_custom_call.1
= control target key start
LH: loop header
LB: loop body
LE: loop exit
PB: predicated region body
PF: predicated region fallthrough
CT: control target
= control target key end

     0   :  { %vm99_vm0 = vcmask 80896   ;;  %v589_v6 = vmov 0   ;;  %s843_s0 = inlined_call_operand.vmem [shape: f32[64,10], index: 0, kind: input, shape index: {}]   ;;  %s844_s1 = inlined_call_operand.vmem [shape: s32[64,1], index: 1, kind: input, shape index: {}]   ;;  %s845_s2 = inlined_call_operand.hbm [shape: f32[8,128], index: 2, kind: output, shape index: {}]  }
   0x1   :  { %v85_v0 = vld [vmem:[%s843_s0 + $0x10] sm:$0xff]  ;;  %v83_v1 = vld [vmem:[%s843_s0] sm:$0xff]  ;;  %v86_v2 = vld [vmem:[%s843_s0 + $0x18] sm:$0xff]  ;;  %500 = vset.pattern.permute.xlu1 %v589_v6  ;;  %499 = vset.pattern.permute.xlu0 %v589_v6 }
   0x2   :  { %v106_v3 = vsel %vm99_vm0, %v85_v0, -inf  ;;  %v100_v4 = vsel %vm99_vm0, %v83_v1, -inf  ;;  %v84_v5 = vld [vmem:[%s843_s0 + $0x8] sm:$0xff]  ;;  %v109_v7 = vsel %vm99_vm0, %v86_v2, -inf  ;;  %v87_v10 = vld [vmem:[%s843_s0 + $0x20] sm:$0xff] }
   0x3   :  { %107 = vmax.xlane.f32.xlu1 %v106_v3  ;;  %101 = vmax.xlane.f32.xlu0 %v100_v4  ;;  %v103_v8 = vsel %vm99_vm0, %v84_v5, -inf  ;;  %v626_v9 = vld [vmem:[%s843_s0 + $0x28] sm:$0xff] }
   0x7   :  { %110 = vmax.xlane.f32.xlu1 %v109_v7  ;;  %104 = vmax.xlane.f32.xlu0 %v103_v8 }
   0x8   :  { %7 = vsyncpa [#allocation5], 0  ;;  %v115_v11 = vsel %vm99_vm0, %v626_v9, -inf  ;;  %v112_v12 = vsel %vm99_vm0, %v87_v10, -inf  ;;  %v637_v13 = vld [vmem:[%s843_s0 + $0x38] sm:$0xff]  ;;  %v642_v14 = vld [vmem:[%s843_s0 + $0x30] sm:$0xff]  ;;  %v172_v31 = vlaneseq }
   0x9   :  { %v121_v15 = vsel %vm99_vm0, %v637_v13, -inf  ;;  %v118_v16 = vsel %vm99_vm0, %v642_v14, -inf  ;;  %v651_v17 = vld [vmem:[%s844_s1 + $0x8] sm:$0xff]  ;;  %v657_v18 = vld [vmem:[%s844_s1 + $0x10] sm:$0xff]  ;;  %v662_v19 = vld [vmem:[%s844_s1] sm:$0xff]  ;;  %vm379_vm11 = vcmask 7168  }
   0xa   :  { %v669_v20 = vld [vmem:[%s844_s1 + $0x18] sm:$0xff]  ;;  %v675_v21 = vld [vmem:[%s844_s1 + $0x20] sm:$0xff]  ;;  %v681_v22 = vld [vmem:[%s844_s1 + $0x28] sm:$0xff]  ;;  %v697_v38 = vand.u32 127, %v172_v31  ;;  %vm354_vm9 = vcmp.ne.s32.totalorder %v662_v19, 255  ;;  %vm355_vm10 = vcmp.ne.s32.totalorder %v651_v17, 255 }
   0xb   :  { %116 = vmax.xlane.f32.xlu1 %v115_v11  ;;  %113 = vmax.xlane.f32.xlu0 %v112_v12  ;;  %v687_v23 = vld [vmem:[%s844_s1 + $0x30] sm:$0xff]  ;;  %v693_v24 = vld [vmem:[%s844_s1 + $0x38] sm:$0xff]  ;;  %vm356_vm12 = vcmp.ne.s32.totalorder %v657_v18, 255  ;;  %vm357_vm13 = vcmp.ne.s32.totalorder %v669_v20, 255  ;;  %vm358_vm14 = vcmp.ne.s32.totalorder %v675_v21, 255  ;;  %vm359_vm15 = vcmp.ne.s32.totalorder %v681_v22, 255 }
   0xc   :  { %s591_s15 = smov [#allocation4]  }
   0xd   :  { %s468_s16 = sshll.u32 %s591_s15, 4  ;;  %s469_s16 = int_to_ptr.vmem [resolvable:$true] %s468_s16 }
   0xe   :  { %s565_s17 = scalar_lea.vmem %s469_s16, 128  ;;  %p570_p1 = scmp.lt.s32.totalorder %s469_s16, %s469_s16 }
   0xf   :  { %122 = vmax.xlane.f32.xlu1 %v121_v15  ;;  %119 = vmax.xlane.f32.xlu0 %v118_v16  ;;  %p566_p0 = scmp.ne.s32.totalorder %s469_s16, %s565_s17  ;;  %p571_p2 = scmp.lt.s32.totalorder %s565_s17, %s565_s17 }
  0x11   :  { %p572_p3 = por %p571_p2, %p570_p1 }
  0x13   :  { %p573_p4 = pnand %p572_p3, %p566_p0 }
  0x20   :  { %178 = vperm.xlu1 %500, %v651_v17  }
  0x24   :  { %181 = vperm.xlu1 %500, %v657_v18  }
  0x25   :  { %175 = vperm.xlu0 %499, %v662_v19  }
  0x28   :  { %184 = vperm.xlu1 %500, %v669_v20  }
  0x2c   :  { %187 = vperm.xlu1 %500, %v675_v21  }
  0x30   :  { %190 = vperm.xlu1 %500, %v681_v22  }
  0x34   :  { %193 = vperm.xlu1 %500, %v687_v23  }
  0x38   :  { %196 = vperm.xlu1 %500, %v693_v24  }
  0x90   :  { %v108_v25 = vpop.xlane.xlu1 %107  ;;  %v102_v26 = vpop.xlane.xlu0 %101 }
  0x91   :  { %v126_v32 = vsub.f32 %v85_v0, %v108_v25  ;;  %v124_v35 = vsub.f32 %v83_v1, %v102_v26 }
  0x93   :  { %v136_v39 = vmul.f32 1.442695, %v126_v32  ;;  %v132_v40 = vmul.f32 1.442695, %v124_v35 }
  0x94   :  { %v111_v27 = vpop.xlane.xlu1 %110  ;;  %v105_v28 = vpop.xlane.xlu0 %104 }
  0x95   :  { %v125_v29 = vsub.f32 %v84_v5, %v105_v28  ;;  %v127_v37 = vsub.f32 %v86_v2, %v111_v27 }
  0x97   :  { %v134_v33 = vmul.f32 1.442695, %v125_v29  ;;  %v138_v43 = vmul.f32 1.442695, %v127_v37 }
  0x98   :  { %v117_v30 = vpop.xlane.xlu1 %116  ;;  %v114_v34 = vpop.xlane.xlu0 %113 }
  0x99   :  { %501 = vpow2.f32 %v134_v33  ;;  %v128_v44 = vsub.f32 %v87_v10, %v114_v34  ;;  %v129_v49 = vsub.f32 %v626_v9, %v117_v30 }
  0x9a   :  { %503 = vpow2.f32 %v136_v39 }
  0x9b   :  { %505 = vpow2.f32 %v132_v40  ;;  %v140_v50 = vmul.f32 1.442695, %v128_v44  ;;  %v142_v57 = vmul.f32 1.442695, %v129_v49 }
  0x9c   :  { %v123_v36 = vpop.xlane.xlu1 %122  ;;  %v120_v41 = vpop.xlane.xlu0 %119  ;;  %507 = vpow2.f32 %v138_v43 }
  0x9d   :  { %509 = vpow2.f32 %v140_v50  ;;  %v130_v58 = vsub.f32 %v642_v14, %v120_v41  ;;  %v131_v1 = vsub.f32 %v637_v13, %v123_v36  ;;  %v590_v36 = vmov 0.0  }
  0x9e   :  { %511 = vpow2.f32 %v142_v57  ;;  %v409_v39 = vsel %vm354_vm9, 1.0, %v590_v36 }
  0x9f   :  { %v144_v2 = vmul.f32 1.442695, %v130_v58  ;;  %v146_v8 = vmul.f32 1.442695, %v131_v1  ;;  %v417_v41 = vsel %vm379_vm11, %v409_v39, 0.0 }
  0xa0   :  { %v179_v42 = vpop.permute.xlu1 %178 }
  0xa1   :  { %vm199_vm1 = vcmp.eq.s32.totalorder %v697_v38, %v179_v42  ;;  %513 = vpow2.f32 %v144_v2  ;;  %v411_v42 = vsel %vm356_vm12, 1.0, %v590_v36 }
  0xa2   :  { %v207_v45 = vsel %vm199_vm1, %v125_v29, 0.0  ;;  %515 = vpow2.f32 %v146_v8  ;;  %vm361_vm1 = vcmp.ne.s32.totalorder %v693_v24, 255 }
  0xa3   :  { %v217_v46 = vsel %vm99_vm0, %v207_v45, 0.0  ;;  %v502_v55 = vpop.eup %501  ;;  %v412_v45 = vsel %vm357_vm13, 1.0, %v590_v36 }
  0xa4   :  { %v182_v47 = vpop.permute.xlu1 %181  ;;  %218 = vadd.xlane.f32.xlu0 %v217_v46  ;;  %v176_v48 = vpop.permute.xlu0 %175  ;;  %v151_v61 = vsel %vm99_vm0, %v502_v55, 0.0  ;;  %v416_v55 = vsel %vm361_vm1, 1.0, %v590_v36 }
  0xa5   :  { %vm200_vm2 = vcmp.eq.s32.totalorder %v697_v38, %v182_v47  ;;  %vm198_vm3 = vcmp.eq.s32.totalorder %v697_v38, %v176_v48  ;;  %v504_v62 = vpop.eup %503  ;;  %v422_v47 = vsel %vm379_vm11, %v412_v45, 0.0  ;;  %v413_v48 = vsel %vm358_vm14, 1.0, %v590_v36 }
  0xa6   :  { %v208_v51 = vsel %vm200_vm2, %v126_v32, 0.0  ;;  %v206_v52 = vsel %vm198_vm3, %v124_v35, 0.0  ;;  %v506_v0 = vpop.eup %505  ;;  %v154_v6 = vsel %vm99_vm0, %v504_v62, 0.0  ;;  %v424_v50 = vsel %vm379_vm11, %v413_v48, 0.0 }
  0xa7   :  { %v220_v53 = vsel %vm99_vm0, %v208_v51, 0.0  ;;  %v214_v54 = vsel %vm99_vm0, %v206_v52, 0.0  ;;  %v508_v4 = vpop.eup %507  ;;  %v148_v9 = vsel %vm99_vm0, %v506_v0, 0.0  ;;  %v414_v51 = vsel %vm359_vm15, 1.0, %v590_v36 }
  0xa8   :  { %v185_v56 = vpop.permute.xlu1 %184  ;;  %221 = vadd.xlane.f32.xlu0 %v220_v53  ;;  %215 = vadd.xlane.f32.xlu1 %v214_v54  ;;  %v157_v10 = vsel %vm99_vm0, %v508_v4, 0.0  ;;  %v510_v11 = vpop.eup %509  ;;  %v426_v53 = vsel %vm379_vm11, %v414_v51, 0.0  ;;  %vm80_vm2 = vcmask 0   ;;  %vm454_vm3 = vcmp.eq.s32.totalorder %v697_v38, 1 }
  0xa9   :  { %vm201_vm4 = vcmp.eq.s32.totalorder %v697_v38, %v185_v56  ;;  %v160_v15 = vsel %vm99_vm0, %v510_v11, 0.0  ;;  %v512_v16 = vpop.eup %511  ;;  %81 = vst.msk [vmem:[#allocation2] sm:$0x1] %vm80_vm2, %v590_v36  ;;  %82 = vst.msk [vmem:[#allocation3] sm:$0x1] %vm80_vm2, %v590_v36 }
  0xaa   :  { %v209_v59 = vsel %vm201_vm4, %v127_v37, 0.0  ;;  %v163_v28 = vsel %vm99_vm0, %v512_v16, 0.0  ;;  %v410_v37 = vsel %vm355_vm10, 1.0, %v590_v36  ;;  %vm453_vm4 = vcmp.eq.s32.totalorder %v697_v38, 0 }
  0xab   :  { %v223_v60 = vsel %vm99_vm0, %v209_v59, 0.0  ;;  %v514_v29 = vpop.eup %513  ;;  %v418_v40 = vsel %vm379_vm11, %v410_v37, 0.0 }
  0xac   :  { %v188_v63 = vpop.permute.xlu1 %187  ;;  %224 = vadd.xlane.f32.xlu0 %v223_v60  ;;  %152 = vadd.xlane.f32.xlu1 %v151_v61  ;;  %v166_v33 = vsel %vm99_vm0, %v514_v29, 0.0  ;;  %v516_v34 = vpop.eup %515  ;;  %v419_v43 = vadd.f32 %v418_v40, %v417_v41 }
  0xad   :  { %vm202_vm5 = vcmp.eq.s32.totalorder %v697_v38, %v188_v63  ;;  %v169_v35 = vsel %vm99_vm0, %v516_v34, 0.0 }
  0xae   :  { %v210_v3 = vsel %vm202_vm5, %v128_v44, 0.0  ;;  %v420_v44 = vsel %vm379_vm11, %v411_v42, 0.0 }
  0xaf   :  { %v226_v5 = vsel %vm99_vm0, %v210_v3, 0.0  ;;  %v421_v46 = vadd.f32 %v420_v44, %v419_v43 }
  0xb0   :  { %v191_v7 = vpop.permute.xlu1 %190  ;;  %227 = vadd.xlane.f32.xlu0 %v226_v5  ;;  %155 = vadd.xlane.f32.xlu1 %v154_v6 }
  0xb1   :  { %vm203_vm6 = vcmp.eq.s32.totalorder %v697_v38, %v191_v7 }
  0xb2   :  { %v211_v13 = vsel %vm203_vm6, %v129_v49, 0.0  ;;  %v423_v49 = vadd.f32 %v422_v47, %v421_v46 }
  0xb3   :  { %v229_v14 = vsel %vm99_vm0, %v211_v13, 0.0 }
  0xb4   :  { %v194_v12 = vpop.permute.xlu1 %193  ;;  %149 = vadd.xlane.f32.xlu0 %v148_v9  ;;  %158 = vadd.xlane.f32.xlu1 %v157_v10  ;;  %v425_v52 = vadd.f32 %v424_v50, %v423_v49 }
  0xb5   :  { %vm204_vm7 = vcmp.eq.s32.totalorder %v697_v38, %v194_v12 }
  0xb6   :  { %v212_v26 = vsel %vm204_vm7, %v130_v58, 0.0  ;;  %v427_v56 = vadd.f32 %v426_v53, %v425_v52  ;;  %v430_v58 = vsel %vm379_vm11, %v416_v55, 0.0 }
  0xb7   :  { %v232_v27 = vsel %vm99_vm0, %v212_v26, 0.0 }
  0xb8   :  { %v197_v25 = vpop.permute.xlu1 %196  ;;  %230 = vadd.xlane.f32.xlu0 %v229_v14  ;;  %161 = vadd.xlane.f32.xlu1 %v160_v15 }
  0xb9   :  { %vm205_vm8 = vcmp.eq.s32.totalorder %v697_v38, %v197_v25 }
  0xba   :  { %v213_v30 = vsel %vm205_vm8, %v131_v1, 0.0 }
  0xbb   :  { %v235_v32 = vsel %vm99_vm0, %v213_v30, 0.0  ;;  %vm360_vm0 = vcmp.ne.s32.totalorder %v687_v23, 255 }
  0xbc   :  { %233 = vadd.xlane.f32.xlu0 %v232_v27  ;;  %164 = vadd.xlane.f32.xlu1 %v163_v28  ;;  %v415_v54 = vsel %vm360_vm0, 1.0, %v590_v36 }
  0xbd   :  { %v428_v57 = vsel %vm379_vm11, %v415_v54, 0.0 }
  0xbe   :  { %v429_v59 = vadd.f32 %v428_v57, %v427_v56 }
  0xc0   :  { %236 = vadd.xlane.f32.xlu0 %v235_v32  ;;  %167 = vadd.xlane.f32.xlu1 %v166_v33  ;;  %v431_v60 = vadd.f32 %v430_v58, %v429_v59 }
  0xc4   :  { %170 = vadd.xlane.f32.xlu1 %v169_v35 }
  0xc8   :  { %432 = vadd.xlane.f32.xlu1 %v431_v60 }
 0x131   :  { %v766_v61 = vpop.xlane.xlu0 %218 }
 0x132   :  { %v264_v62 = vmul.f32 1.442695, %v766_v61 }
 0x134   :  { %517 = vpow2.f32 %v264_v62 }
 0x135   :  { %v769_v63 = vpop.xlane.xlu1 %215  ;;  %v771_v0 = vpop.xlane.xlu0 %221 }
 0x136   :  { %v262_v1 = vmul.f32 1.442695, %v769_v63  ;;  %v266_v2 = vmul.f32 1.442695, %v771_v0 }
 0x138   :  { %519 = vpow2.f32 %v262_v1 }
 0x139   :  { %v153_v3 = vpop.xlane.xlu1 %152  ;;  %v775_v4 = vpop.xlane.xlu0 %224 }
 0x13a   :  { %521 = vrcp.f32 %v153_v3  ;;  %v268_v5 = vmul.f32 1.442695, %v775_v4 }
 0x13b   :  { %523 = vlog2.f32 %v153_v3 }
 0x13c   :  { %525 = vpow2.f32 %v266_v2 }
 0x13d   :  { %v156_v6 = vpop.xlane.xlu1 %155  ;;  %v778_v7 = vpop.xlane.xlu0 %227 }
 0x13e   :  { %527 = vlog2.f32 %v156_v6  ;;  %v270_v8 = vmul.f32 1.442695, %v778_v7  ;;  %v518_v11 = vpop.eup %517 }
 0x13f   :  { %529 = vrcp.f32 %v156_v6 }
 0x140   :  { %531 = vpow2.f32 %v268_v5 }
 0x141   :  { %533 = vpow2.f32 %v270_v8  ;;  %v159_v9 = vpop.xlane.xlu1 %158  ;;  %v150_v10 = vpop.xlane.xlu0 %149 }
 0x142   :  { %535 = vlog2.f32 %v159_v9  ;;  %v520_v12 = vpop.eup %519 }
 0x143   :  { %537 = vrcp.f32 %v159_v9 }
 0x144   :  { %539 = vlog2.f32 %v150_v10  ;;  %v522_v13 = vpop.eup %521 }
 0x145   :  { %541 = vrcp.f32 %v150_v10  ;;  %v162_v14 = vpop.xlane.xlu1 %161  ;;  %v781_v15 = vpop.xlane.xlu0 %230  ;;  %v287_v25 = vmul.f32 %v522_v13, %v518_v11 }
 0x146   :  { %v524_v16 = vpop.eup %523  ;;  %543 = vlog2.f32 %v162_v14  ;;  %v272_v26 = vmul.f32 1.442695, %v781_v15 }
 0x147   :  { %v526_v27 = vpop.eup %525  ;;  %545 = vrcp.f32 %v162_v14  ;;  %v295_v29 = vsub.f32 1.0, %v287_v25  ;;  %v241_v32 = vmul.f32 0.6931472, %v524_v16 }
 0x148   :  { %v528_v28 = vpop.eup %527  ;;  %547 = vpow2.f32 %v272_v26 }
 0x149   :  { %v530_v30 = vpop.eup %529  ;;  %v165_v33 = vpop.xlane.xlu1 %164  ;;  %v303_v41 = vmul.f32 %v295_v29, %v295_v29  ;;  %v243_v42 = vmul.f32 0.6931472, %v528_v28  ;;  %v255_v46 = vsub.f32 %v766_v61, %v241_v32 }
 0x14a   :  { %v784_v34 = vpop.xlane.xlu0 %233  ;;  %v532_v35 = vpop.eup %531  ;;  %v288_v37 = vmul.f32 %v530_v30, %v526_v27  ;;  %549 = vlog2.f32 %v165_v33 }
 0x14b   :  { %v274_v39 = vmul.f32 1.442695, %v784_v34  ;;  %v534_v40 = vpop.eup %533  ;;  %551 = vrcp.f32 %v165_v33  ;;  %v311_v54 = vmul.f32 %v303_v41, %v255_v46  ;;  %v256_v55 = vsub.f32 %v771_v0, %v243_v42 }
 0x14c   :  { %v536_v43 = vpop.eup %535  ;;  %v296_v44 = vsub.f32 1.0, %v288_v37 }
 0x14d   :  { %v538_v45 = vpop.eup %537  ;;  %v245_v47 = vmul.f32 0.6931472, %v536_v43  ;;  %553 = vpow2.f32 %v274_v39  ;;  %v168_v48 = vpop.xlane.xlu1 %167  ;;  %v319_v10 = vsub.f32 0.0, %v311_v54 }
 0x14e   :  { %v788_v49 = vpop.xlane.xlu0 %236  ;;  %v540_v50 = vpop.eup %539  ;;  %v304_v51 = vmul.f32 %v296_v44, %v296_v44  ;;  %v289_v52 = vmul.f32 %v538_v45, %v532_v35  ;;  %555 = vlog2.f32 %v168_v48 }
 0x14f   :  { %v542_v53 = vpop.eup %541  ;;  %v239_v56 = vmul.f32 0.6931472, %v540_v50  ;;  %557 = vrcp.f32 %v168_v48  ;;  %v276_v60 = vmul.f32 1.442695, %v788_v49  ;;  %v257_v1 = vsub.f32 %v775_v4, %v245_v47 }
 0x150   :  { %v544_v57 = vpop.eup %543  ;;  %v297_v58 = vsub.f32 1.0, %v289_v52  ;;  %v286_v59 = vmul.f32 %v542_v53, %v520_v12  ;;  %v312_v62 = vmul.f32 %v304_v51, %v256_v55 }
 0x151   :  { %v546_v61 = vpop.eup %545  ;;  %v171_v2 = vpop.xlane.xlu1 %170  ;;  %v247_v6 = vmul.f32 0.6931472, %v544_v57  ;;  %v254_v0 = vsub.f32 %v769_v63, %v239_v56  ;;  %v372_v63 = vsel %vm355_vm10, %v319_v10, 0.0 }
 0x152   :  { %v305_v3 = vmul.f32 %v297_v58, %v297_v58  ;;  %v294_v5 = vsub.f32 1.0, %v286_v59  ;;  %v290_v8 = vmul.f32 %v546_v61, %v534_v40  ;;  %v548_v9 = vpop.eup %547  ;;  %559 = vlog2.f32 %v171_v2 }
 0x153   :  { %561 = vpow2.f32 %v276_v60  ;;  %v320_v25 = vsub.f32 0.0, %v312_v62  ;;  %v258_v27 = vsub.f32 %v778_v7, %v247_v6  ;;  %v381_v46 = vsel %vm379_vm11, %v372_v63, 0.0 }
 0x154   :  { %v550_v11 = vpop.eup %549  ;;  %v313_v13 = vmul.f32 %v305_v3, %v257_v1  ;;  %v302_v14 = vmul.f32 %v294_v5, %v294_v5  ;;  %v298_v12 = vsub.f32 1.0, %v290_v8  ;;  %563 = vrcp.f32 %v171_v2 }
 0x155   :  { %v552_v16 = vpop.eup %551  ;;  %v249_v26 = vmul.f32 0.6931472, %v550_v11  ;;  %v373_v41 = vsel %vm356_vm12, %v320_v25, 0.0  ;;  %v433_v23 = vpop.xlane.xlu1 %432 }
 0x156   :  { %v310_v4 = vmul.f32 %v302_v14, %v254_v0  ;;  %v306_v28 = vmul.f32 %v298_v12, %v298_v12  ;;  %v291_v29 = vmul.f32 %v552_v16, %v548_v9  ;;  %v321_v32 = vsub.f32 0.0, %v313_v13 }
 0x157   :  { %v554_v30 = vpop.eup %553  ;;  %v259_v42 = vsub.f32 %v781_v15, %v249_v26  ;;  %v383_v15 = vsel %vm379_vm11, %v373_v41, 0.0 }
 0x158   :  { %v556_v33 = vpop.eup %555  ;;  %v318_v35 = vsub.f32 0.0, %v310_v4  ;;  %v314_v37 = vmul.f32 %v306_v28, %v258_v27  ;;  %v299_v39 = vsub.f32 1.0, %v291_v29  ;;  %v374_v17 = vsel %vm357_vm13, %v321_v32, 0.0 }
 0x159   :  { %v558_v40 = vpop.eup %557  ;;  %v251_v44 = vmul.f32 0.6931472, %v556_v33  ;;  %v385_v58 = vsel %vm379_vm11, %v374_v17, 0.0 }
 0x15a   :  { %v371_v7 = vsel %vm354_vm9, %v318_v35, 0.0  ;;  %v307_v43 = vmul.f32 %v299_v39, %v299_v39  ;;  %v292_v45 = vmul.f32 %v558_v40, %v554_v30  ;;  %v322_v50 = vsub.f32 0.0, %v314_v37  ;;  %v370_v37 = vld [vmem:[#allocation2] sm:$0x1]  ;;  %v408_v39 = vld [vmem:[#allocation3] sm:$0x1] }
 0x15b   :  { %v380_v47 = vsel %vm379_vm11, %v371_v7, 0.0  ;;  %v260_v54 = vsub.f32 %v784_v34, %v251_v44  ;;  %v327_v44 = vshrl.u32 %v172_v31, 7 }
 0x15c   :  { %v382_v48 = vadd.f32 %v381_v46, %v380_v47  ;;  %v315_v51 = vmul.f32 %v307_v43, %v259_v42  ;;  %v300_v18 = vsub.f32 1.0, %v292_v45  ;;  %v560_v52 = vpop.eup %559  ;;  %v375_v61 = vsel %vm358_vm14, %v322_v50, 0.0 }
 0x15d   :  { %v562_v53 = vpop.eup %561  ;;  %v253_v20 = vmul.f32 0.6931472, %v560_v52  ;;  %v387_v5 = vsel %vm379_vm11, %v375_v61, 0.0  ;;  %vm459_vm5 = vcmp.eq.s32.totalorder %v327_v44, 0 }
 0x15e   :  { %v323_v19 = vsub.f32 0.0, %v315_v51  ;;  %v308_v55 = vmul.f32 %v300_v18, %v300_v18  ;;  %v384_v56 = vadd.f32 %v383_v15, %v382_v48  ;;  %v564_v57 = vpop.eup %563 }
 0x15f   :  { %v293_v59 = vmul.f32 %v564_v57, %v562_v53  ;;  %v261_v34 = vsub.f32 %v788_v49, %v253_v20  ;;  %v434_v49 = vrot.slane %v433_v23, 4 }
 0x160   :  { %v316_v60 = vmul.f32 %v308_v55, %v260_v54  ;;  %v386_v62 = vadd.f32 %v385_v58, %v384_v56  ;;  %v376_v3 = vsel %vm359_vm15, %v323_v19, 0.0 }
 0x161   :  { %v301_v1 = vsub.f32 1.0, %v293_v59  ;;  %v389_v10 = vsel %vm379_vm11, %v376_v3, 0.0  ;;  %v435_v25 = vadd.f32 %v434_v49, %v433_v23 }
 0x162   :  { %v324_v2 = vsub.f32 0.0, %v316_v60  ;;  %v388_v9 = vadd.f32 %v387_v5, %v386_v62 }
 0x163   :  { %v309_v6 = vmul.f32 %v301_v1, %v301_v1  ;;  %v436_v26 = vrot.slane %v435_v25, 2 }
 0x164   :  { %v377_v8 = vsel %vm360_vm0, %v324_v2, 0.0  ;;  %v390_v13 = vadd.f32 %v389_v10, %v388_v9 }
 0x165   :  { %v317_v0 = vmul.f32 %v309_v6, %v261_v34  ;;  %v391_v21 = vsel %vm379_vm11, %v377_v8, 0.0  ;;  %v437_v28 = vadd.f32 %v436_v26, %v435_v25 }
 0x166   :  { %v392_v14 = vadd.f32 %v391_v21, %v390_v13 }
 0x167   :  { %v325_v11 = vsub.f32 0.0, %v317_v0  ;;  %v438_v32 = vrot.slane %v437_v28, 1 }
 0x169   :  { %v378_v22 = vsel %vm361_vm1, %v325_v11, 0.0  ;;  %v439_v35 = vadd.f32 %v438_v32, %v437_v28 }
 0x16a   :  { %v393_v12 = vsel %vm379_vm11, %v378_v22, 0.0 }
 0x16b   :  { %v394_v16 = vadd.f32 %v393_v12, %v392_v14 }
 0x16d   :  { %395 = vadd.xlane.f32.xlu0 %v394_v16 }
 0x1fa   :  { %v396_v4 = vpop.xlane.xlu0 %395 }
 0x1fb   :  { %v397_v27 = vrot.slane %v396_v4, 4 }
 0x1fd   :  { %v398_v24 = vadd.f32 %v397_v27, %v396_v4 }
 0x1ff   :  { %v399_v29 = vrot.slane %v398_v24, 2 }
 0x201   :  { %v400_v30 = vadd.f32 %v399_v29, %v398_v24 }
 0x203   :  { %v401_v33 = vrot.slane %v400_v30, 1 }
 0x205   :  { %v402_v63 = vadd.f32 %v401_v33, %v400_v30 }
 0x207   :  { %488 = vpush %v402_v63 }
 0x208   :  { %490 = vpush %v439_v35 }
 0x238   :  { %s489_s1 = spop %488 }
 0x239   :  { %v404_v36 = vstv %s489_s1  ;;  %s491_s12 = spop %490 }
 0x23a   :  { %v405_v40 = vadd.f32 %v404_v36, %v370_v37  ;;  %v441_v41 = vstv %s491_s12 }
 0x23b   :  { %v442_v42 = vadd.f32 %v441_v41, %v408_v39 }
 0x23c   :  { %407 = vst.msk [vmem:[#allocation2] sm:$0x1] %vm80_vm2, %v405_v40 }
 0x23d   :  { %443 = vst.msk [vmem:[#allocation3] sm:$0x1] %vm80_vm2, %v442_v42 }
 0x243   :  { %v447_v7 = vld [vmem:[#allocation2] sm:$0x1] }
 0x244   :  { %492 = vpush %v447_v7  ;;  %v450_v43 = vld [vmem:[#allocation3] sm:$0x1] }
 0x245   :  { %494 = vpush %v450_v43 }
 0x275   :  { %s493_s13 = spop %492 }
 0x276   :  { %v457_v45 = vstv %s493_s13  ;;  %s495_s14 = spop %494 }
 0x277   :  { %v455_v46 = vstv %s495_s14 }
 0x278   :  { %v456_v17 = vsel %vm454_vm3, %v455_v46, 0.0 }
 0x279   :  { %v458_v47 = vsel %vm453_vm4, %v457_v45, %v456_v17 }
 0x27a   :  { %v460_v48 = vsel %vm459_vm5, %v458_v47, 0.0 }
 0x27b   :  { %461 = vst [vmem:[#allocation4] sm:$0xff] %v460_v48 }
 0x27c   :  { %576 = shalt.err (!%p573_p4)
}
 0x27d   :  { %s577_s20 = scalar_lea.hbm %s845_s2, 128 }
 0x27e   :  { %p578_p5 = scmp.ne.s32.totalorder %s845_s2, %s577_s20  ;;  %p581_p6 = scmp.lt.u32.totalorder %s577_s20, %s845_s2 }
 0x280   :  { %p583_p7 = pnand %p581_p6, %p578_p5 }
 0x282   :  { %586 = shalt.err (!%p583_p7)
}
 0x283   :  { %471 = dma.vmem_to_hbm [thread:$0]  %s469_s16, 128, %s845_s2, [#allocation5]  }
 0x284   :  { %587 = dma.done.wait [#allocation5], 128  }
 0x285   :  { %588 = vsyncadd [#allocation5], 4294967168 }
 0x286   :  { %475 = vsyncpa [#allocation5], 1 }

</bundles_post_ra>
